<compile_context>
chip_gen: v6e
topology: v6e:2x2x1
jax: 0.10.0
libtpu: 0.0.40
codegen_flags: <defaults>
</compile_context>

<pallas_src>
import jax
import jax.numpy as jnp
from jax.experimental import pallas as pl
from jax.experimental.pallas import tpu as pltpu

NEG_SLOPE = 0.2   # LeakyReLU negative slope from the module
BN_EPS = 1e-5     # nn.BatchNorm2d default eps


def _round_up(x, m):
    return (x + m - 1) // m * m


def _cdiv(a, b):
    return (a + b - 1) // b


# ----------------------------------------------------------------------------
# Kernel: one (OC, TF) lane-dense output tile of the fused
#   y = BN_affine( LeakyReLU( conv(x) + bias ) )
# conv is computed as 16 accumulated (OC,IC) x (IC,TF) matmuls, one per tap,
# where each tap's RHS is a static lane-shifted window of a parity plane.
# ----------------------------------------------------------------------------
def _make_kernel(OC, IC, TF, Wh):
    # tap (a, b) in {0,1}^2 reads parity-plane flat index f + a*Wh + b
    shifts = [a * Wh + b for a in (0, 1) for b in (0, 1)]       # ab = 2*a + b

    def kernel(xq_ref, wq_ref, aux_ref, o_ref):
        # xq_ref : (1, 1, 4, IC, TF+LEXT) bf16  parity planes, flat tile + halo (streamed)
        # wq_ref : (4, 4, OC, IC)         bf16  weights grouped by (parity, tap) (resident)
        # aux_ref: (OC, 4)                f32   [bias, scale, 0.2*scale, shift]  (resident)
        # o_ref  : (1, OC, TF)            f32   lane-dense output tile
        acc = jnp.zeros((OC, TF), jnp.float32)
        for pq in range(4):
            plane = xq_ref[0, 0, pq]                            # (IC, TF+LEXT)
            for ab in range(4):
                sh = shifts[ab]
                rhs = plane[:, sh:sh + TF]                      # static lane window
                acc = acc + jnp.dot(wq_ref[pq, ab], rhs,
                                    preferred_element_type=jnp.float32)
        bias = aux_ref[:, 0:1]
        s_pos = aux_ref[:, 1:2]
        s_neg = aux_ref[:, 2:3]
        shift = aux_ref[:, 3:4]
        t = acc + bias                                          # conv bias
        # LeakyReLU(0.2) fused with the folded BatchNorm affine as one select-of-scales
        o_ref[0] = (t * jnp.where(t >= 0.0, s_pos, s_neg) + shift).astype(o_ref.dtype)

    return kernel


# ----------------------------------------------------------------------------
# NSynthBlock forward, mode='enc'.  x: (N, C_in, H, W) float32 (NCHW, as PyTorch).
# ----------------------------------------------------------------------------
def nsynth_block_enc(params, x, stride=(2, 2), pad=(1, 1),
                     stream_dtype=jnp.bfloat16, target_lanes=4096):
    w, b, gamma, beta, r_mean, r_var = params
    OC, IC, KH, KW = w.shape
    N, C, H, W = x.shape
    assert C == IC
    SH, SW = stride
    PH, PW = pad
    # Parity decomposition assumes the NSynthBlock defaults.
    assert (KH, KW, SH, SW, PH, PW) == (4, 4, 2, 2, 1, 1), "enc defaults only"
    assert H % 2 == 0 and W % 2 == 0

    OH = (H + 2 * PH - KH) // SH + 1
    OW = (W + 2 * PW - KW) // SW + 1
    Hp, Wp = H + 2 * PH, W + 2 * PW
    Hh, Wh = Hp // 2, Wp // 2                 # parity-plane spatial dims (= OH+1, OW+1)

    # ---- flat-spatial tiling (lane axis): f = oh*Wh + ow, ow==OW column is junk ----
    F = OH * Wh
    nT = max(1, _cdiv(F, target_lanes))       # big tiles (2-4K lanes) to amortize step cost
    TF = _round_up(_cdiv(F, nT), 128)
    F_pad = nT * TF
    LEXT = _round_up(Wh + 2, 128)             # halo: max tap shift is Wh + 1
    TIN = TF + LEXT

    # ---- parity space-to-depth of the padded input (no im2col, ~1x bytes) ---------
    xp = jnp.pad(x, ((0, 0), (0, 0), (PH, PH), (PW, PW))).astype(stream_dtype)
    xq = xp.reshape(N, IC, Hh, 2, Wh, 2).transpose(0, 3, 5, 1, 2, 4)   # (N,p,q,IC,Hh,Wh)
    xqf = xq.reshape(N, 4, IC, Hh * Wh)
    xqf = jnp.pad(xqf, ((0, 0), (0, 0), (0, 0), (0, F_pad + LEXT - Hh * Wh)))
    # Overlapping flat tiles (halo = LEXT lanes, ~3% duplication at TF=4096) so every
    # grid step streams one contiguous, fully blocked slab -- no in-kernel dynamic slices.
    tiles = [jax.lax.slice_in_dim(xqf, j * TF, j * TF + TIN, axis=3) for j in range(nT)]
    xq_t = jnp.stack(tiles, axis=1)                                    # (N, nT, 4, IC, TIN)

    # ---- weights regrouped by (row/col parity, tap) --------------------------------
    wq = (w.reshape(OC, IC, 2, 2, 2, 2)       # (OC, IC, a, p, b, q); kh=2a+p, kw=2b+q
            .transpose(3, 5, 2, 4, 0, 1)      # (p, q, a, b, OC, IC)
            .reshape(4, 4, OC, IC)
            .astype(stream_dtype))

    # ---- fold BatchNorm (inference) + conv bias into one resident epilogue slab ----
    inv_std = jax.lax.rsqrt(r_var + BN_EPS)
    scale = gamma * inv_std
    shift = beta - r_mean * scale
    aux = jnp.stack([b, scale, NEG_SLOPE * scale, shift], axis=1).astype(jnp.float32)

    kernel = _make_kernel(OC, IC, TF, Wh)

    out_flat = pl.pallas_call(
        kernel,
        out_shape=jax.ShapeDtypeStruct((N, OC, F_pad), jnp.float32),
        grid_spec=pltpu.PrefetchScalarGridSpec(
            num_scalar_prefetch=0,
            grid=(N, nT),
            in_specs=[
                pl.BlockSpec((1, 1, 4, IC, TIN), lambda n, j: (n, j, 0, 0, 0)),  # streamed
                pl.BlockSpec((4, 4, OC, IC), lambda n, j: (0, 0, 0, 0)),         # resident
                pl.BlockSpec((OC, 4), lambda n, j: (0, 0)),                      # resident
            ],
            out_specs=pl.BlockSpec((1, OC, TF), lambda n, j: (n, 0, j)),
        ),
        compiler_params=pltpu.CompilerParams(
            dimension_semantics=("parallel", "parallel")),
    )(xq_t, wq, aux)

    # Drop the one junk column per output row (flat layout uses row stride Wh=OW+1).
    # Single output-sized slice, no transpose, already NCHW-ordered.
    out = out_flat[:, :, :OH * Wh].reshape(N, OC, OH, Wh)[:, :, :, :OW]
    return out


# ----------------------------------------------------------------------------
# Deterministic synthetic parameters (PyTorch-like shapes/init; no checkpoint).
# ----------------------------------------------------------------------------
def init_params(key, in_ch, out_ch, k_size=(4, 4)):
    kw_, kb_, kg_, kbe_, km_, kv_ = jax.random.split(key, 6)
    fan_in = in_ch * k_size[0] * k_size[1]
    bound = 1.0 / jnp.sqrt(float(fan_in))
    w = jax.random.uniform(kw_, (out_ch, in_ch) + k_size, jnp.float32, -bound, bound)
    b = jax.random.uniform(kb_, (out_ch,), jnp.float32, -bound, bound)
    gamma = jax.random.uniform(kg_, (out_ch,), jnp.float32, 0.5, 1.5)
    beta = jax.random.uniform(kbe_, (out_ch,), jnp.float32, -0.5, 0.5)
    r_mean = jax.random.uniform(km_, (out_ch,), jnp.float32, -0.5, 0.5)
    r_var = jax.random.uniform(kv_, (out_ch,), jnp.float32, 0.5, 1.5)
    return (w, b, gamma, beta, r_mean, r_var)


# Pure-JAX reference (lax conv at HIGHEST precision) for a correctness check.
def reference(params, x, stride=(2, 2), pad=(1, 1)):
    w, b, gamma, beta, r_mean, r_var = params
    y = jax.lax.conv_general_dilated(
        x, w, window_strides=stride,
        padding=((pad[0], pad[0]), (pad[1], pad[1])),
        dimension_numbers=("NCHW", "OIHW", "NCHW"),
        precision=jax.lax.Precision.HIGHEST)
    y = y + b[None, :, None, None]
    y = jnp.where(y >= 0.0, y, NEG_SLOPE * y)
    inv_std = jax.lax.rsqrt(r_var + BN_EPS)
    y = ((y - r_mean[None, :, None, None]) * (gamma * inv_std)[None, :, None, None]
         + beta[None, :, None, None])
    return y


if __name__ == "__main__":
    in_ch, out_ch = 4, 8
    N, H, W = 2, 16, 16          # -> output spatial 8x8

    key = jax.random.PRNGKey(0)
    k_p, k_x = jax.random.split(key)
    params = init_params(k_p, in_ch, out_ch)
    x = jax.random.normal(k_x, (N, in_ch, H, W), jnp.float32)

    fwd = jax.jit(nsynth_block_enc)
    out = fwd(params, x)
    jax.block_until_ready(out)

    assert out.shape == (N, out_ch, 8, 8), out.shape

    ref = reference(params, x)
    max_err = float(jnp.max(jnp.abs(out - ref)))
    # Tolerance accounts for bf16 streaming of inputs/weights (f32 accumulation).
    assert jnp.allclose(out, ref, atol=5e-2, rtol=1e-2), max_err

    print("KERNEL_OK")
</pallas_src>

<mosaic_0001>
module attributes {stable_mosaic.version = 11 : i64} {
  func.func @kernel(%arg0: i32, %arg1: i32, %arg2: memref<1x1x4x4x256xbf16, #tpu.memory_space<vmem>>, %arg3: memref<4x4x8x4xbf16, #tpu.memory_space<vmem>>, %arg4: memref<8x4xf32, #tpu.memory_space<vmem>>, %arg5: memref<1x8x128xf32, #tpu.memory_space<vmem>>) attributes {dimension_semantics = [#tpu.dimension_semantics<parallel>, #tpu.dimension_semantics<parallel>], iteration_bounds = array<i64: 2, 1>, scalar_prefetch = 0 : i64, scratch_operands = 0 : i64, tpu.core_type = #tpu.core_type<tc>, window_params = [{transform_indices = @transform_0, window_bounds = array<i64: 1, 1, 4, 4, 256>}, {pipeline_mode = #tpu.pipeline_mode<synchronous>, transform_indices = @transform_1, window_bounds = array<i64: 4, 4, 8, 4>}, {pipeline_mode = #tpu.pipeline_mode<synchronous>, transform_indices = @transform_2, window_bounds = array<i64: 8, 4>}, {transform_indices = @transform_3, window_bounds = array<i64: 1, 8, 128>}]} {
    %cst = arith.constant 0.000000e+00 : f32
    %0 = vector.broadcast %cst : f32 to vector<8x128xf32>
    %c0 = arith.constant 0 : index
    %c0_0 = arith.constant 0 : index
    %c0_1 = arith.constant 0 : index
    %c0_2 = arith.constant 0 : index
    %c0_3 = arith.constant 0 : index
    %1 = vector.load %arg2[%c0, %c0_0, %c0_1, %c0_2, %c0_3] : memref<1x1x4x4x256xbf16, #tpu.memory_space<vmem>>, vector<1x1x1x4x256xbf16>
    %2 = vector.shape_cast %1 : vector<1x1x1x4x256xbf16> to vector<4x256xbf16>
    %3 = vector.extract_strided_slice %2 {offsets = [0, 0], sizes = [4, 128], strides = [1, 1]} : vector<4x256xbf16> to vector<4x128xbf16>
    %c0_4 = arith.constant 0 : index
    %c0_5 = arith.constant 0 : index
    %c0_6 = arith.constant 0 : index
    %c0_7 = arith.constant 0 : index
    %4 = vector.load %arg3[%c0_4, %c0_5, %c0_6, %c0_7] : memref<4x4x8x4xbf16, #tpu.memory_space<vmem>>, vector<1x1x8x4xbf16>
    %5 = vector.shape_cast %4 : vector<1x1x8x4xbf16> to vector<8x4xbf16>
    %cst_8 = arith.constant dense<0.000000e+00> : vector<8x128xf32>
    %6 = tpu.matmul %5, %3, %cst_8 {dimension_numbers = #tpu.dot_dimension_numbers<[1], [0], [0], [1], [0, 0, 1, 1], [], []>} : vector<8x4xbf16>, vector<4x128xbf16>, vector<8x128xf32> -> vector<8x128xf32>
    %7 = arith.addf %0, %6 : vector<8x128xf32>
    %8 = vector.extract_strided_slice %2 {offsets = [0, 1], sizes = [4, 128], strides = [1, 1]} : vector<4x256xbf16> to vector<4x128xbf16>
    %c0_9 = arith.constant 0 : index
    %c1 = arith.constant 1 : index
    %c0_10 = arith.constant 0 : index
    %c0_11 = arith.constant 0 : index
    %9 = vector.load %arg3[%c0_9, %c1, %c0_10, %c0_11] : memref<4x4x8x4xbf16, #tpu.memory_space<vmem>>, vector<1x1x8x4xbf16>
    %10 = vector.shape_cast %9 : vector<1x1x8x4xbf16> to vector<8x4xbf16>
    %cst_12 = arith.constant dense<0.000000e+00> : vector<8x128xf32>
    %11 = tpu.matmul %10, %8, %cst_12 {dimension_numbers = #tpu.dot_dimension_numbers<[1], [0], [0], [1], [0, 0, 1, 1], [], []>} : vector<8x4xbf16>, vector<4x128xbf16>, vector<8x128xf32> -> vector<8x128xf32>
    %12 = arith.addf %7, %11 : vector<8x128xf32>
    %13 = vector.extract_strided_slice %2 {offsets = [0, 9], sizes = [4, 128], strides = [1, 1]} : vector<4x256xbf16> to vector<4x128xbf16>
    %c0_13 = arith.constant 0 : index
    %c2 = arith.constant 2 : index
    %c0_14 = arith.constant 0 : index
    %c0_15 = arith.constant 0 : index
    %14 = vector.load %arg3[%c0_13, %c2, %c0_14, %c0_15] : memref<4x4x8x4xbf16, #tpu.memory_space<vmem>>, vector<1x1x8x4xbf16>
    %15 = vector.shape_cast %14 : vector<1x1x8x4xbf16> to vector<8x4xbf16>
    %cst_16 = arith.constant dense<0.000000e+00> : vector<8x128xf32>
    %16 = tpu.matmul %15, %13, %cst_16 {dimension_numbers = #tpu.dot_dimension_numbers<[1], [0], [0], [1], [0, 0, 1, 1], [], []>} : vector<8x4xbf16>, vector<4x128xbf16>, vector<8x128xf32> -> vector<8x128xf32>
    %17 = arith.addf %12, %16 : vector<8x128xf32>
    %18 = vector.extract_strided_slice %2 {offsets = [0, 10], sizes = [4, 128], strides = [1, 1]} : vector<4x256xbf16> to vector<4x128xbf16>
    %c0_17 = arith.constant 0 : index
    %c3 = arith.constant 3 : index
    %c0_18 = arith.constant 0 : index
    %c0_19 = arith.constant 0 : index
    %19 = vector.load %arg3[%c0_17, %c3, %c0_18, %c0_19] : memref<4x4x8x4xbf16, #tpu.memory_space<vmem>>, vector<1x1x8x4xbf16>
    %20 = vector.shape_cast %19 : vector<1x1x8x4xbf16> to vector<8x4xbf16>
    %cst_20 = arith.constant dense<0.000000e+00> : vector<8x128xf32>
    %21 = tpu.matmul %20, %18, %cst_20 {dimension_numbers = #tpu.dot_dimension_numbers<[1], [0], [0], [1], [0, 0, 1, 1], [], []>} : vector<8x4xbf16>, vector<4x128xbf16>, vector<8x128xf32> -> vector<8x128xf32>
    %22 = arith.addf %17, %21 : vector<8x128xf32>
    %c0_21 = arith.constant 0 : index
    %c0_22 = arith.constant 0 : index
    %c1_23 = arith.constant 1 : index
    %c0_24 = arith.constant 0 : index
    %c0_25 = arith.constant 0 : index
    %23 = vector.load %arg2[%c0_21, %c0_22, %c1_23, %c0_24, %c0_25] : memref<1x1x4x4x256xbf16, #tpu.memory_space<vmem>>, vector<1x1x1x4x256xbf16>
    %24 = vector.shape_cast %23 : vector<1x1x1x4x256xbf16> to vector<4x256xbf16>
    %25 = vector.extract_strided_slice %24 {offsets = [0, 0], sizes = [4, 128], strides = [1, 1]} : vector<4x256xbf16> to vector<4x128xbf16>
    %c1_26 = arith.constant 1 : index
    %c0_27 = arith.constant 0 : index
    %c0_28 = arith.constant 0 : index
    %c0_29 = arith.constant 0 : index
    %26 = vector.load %arg3[%c1_26, %c0_27, %c0_28, %c0_29] : memref<4x4x8x4xbf16, #tpu.memory_space<vmem>>, vector<1x1x8x4xbf16>
    %27 = vector.shape_cast %26 : vector<1x1x8x4xbf16> to vector<8x4xbf16>
    %cst_30 = arith.constant dense<0.000000e+00> : vector<8x128xf32>
    %28 = tpu.matmul %27, %25, %cst_30 {dimension_numbers = #tpu.dot_dimension_numbers<[1], [0], [0], [1], [0, 0, 1, 1], [], []>} : vector<8x4xbf16>, vector<4x128xbf16>, vector<8x128xf32> -> vector<8x128xf32>
    %29 = arith.addf %22, %28 : vector<8x128xf32>
    %30 = vector.extract_strided_slice %24 {offsets = [0, 1], sizes = [4, 128], strides = [1, 1]} : vector<4x256xbf16> to vector<4x128xbf16>
    %c1_31 = arith.constant 1 : index
    %c1_32 = arith.constant 1 : index
    %c0_33 = arith.constant 0 : index
    %c0_34 = arith.constant 0 : index
    %31 = vector.load %arg3[%c1_31, %c1_32, %c0_33, %c0_34] : memref<4x4x8x4xbf16, #tpu.memory_space<vmem>>, vector<1x1x8x4xbf16>
    %32 = vector.shape_cast %31 : vector<1x1x8x4xbf16> to vector<8x4xbf16>
    %cst_35 = arith.constant dense<0.000000e+00> : vector<8x128xf32>
    %33 = tpu.matmul %32, %30, %cst_35 {dimension_numbers = #tpu.dot_dimension_numbers<[1], [0], [0], [1], [0, 0, 1, 1], [], []>} : vector<8x4xbf16>, vector<4x128xbf16>, vector<8x128xf32> -> vector<8x128xf32>
    %34 = arith.addf %29, %33 : vector<8x128xf32>
    %35 = vector.extract_strided_slice %24 {offsets = [0, 9], sizes = [4, 128], strides = [1, 1]} : vector<4x256xbf16> to vector<4x128xbf16>
    %c1_36 = arith.constant 1 : index
    %c2_37 = arith.constant 2 : index
    %c0_38 = arith.constant 0 : index
    %c0_39 = arith.constant 0 : index
    %36 = vector.load %arg3[%c1_36, %c2_37, %c0_38, %c0_39] : memref<4x4x8x4xbf16, #tpu.memory_space<vmem>>, vector<1x1x8x4xbf16>
    %37 = vector.shape_cast %36 : vector<1x1x8x4xbf16> to vector<8x4xbf16>
    %cst_40 = arith.constant dense<0.000000e+00> : vector<8x128xf32>
    %38 = tpu.matmul %37, %35, %cst_40 {dimension_numbers = #tpu.dot_dimension_numbers<[1], [0], [0], [1], [0, 0, 1, 1], [], []>} : vector<8x4xbf16>, vector<4x128xbf16>, vector<8x128xf32> -> vector<8x128xf32>
    %39 = arith.addf %34, %38 : vector<8x128xf32>
    %40 = vector.extract_strided_slice %24 {offsets = [0, 10], sizes = [4, 128], strides = [1, 1]} : vector<4x256xbf16> to vector<4x128xbf16>
    %c1_41 = arith.constant 1 : index
    %c3_42 = arith.constant 3 : index
    %c0_43 = arith.constant 0 : index
    %c0_44 = arith.constant 0 : index
    %41 = vector.load %arg3[%c1_41, %c3_42, %c0_43, %c0_44] : memref<4x4x8x4xbf16, #tpu.memory_space<vmem>>, vector<1x1x8x4xbf16>
    %42 = vector.shape_cast %41 : vector<1x1x8x4xbf16> to vector<8x4xbf16>
    %cst_45 = arith.constant dense<0.000000e+00> : vector<8x128xf32>
    %43 = tpu.matmul %42, %40, %cst_45 {dimension_numbers = #tpu.dot_dimension_numbers<[1], [0], [0], [1], [0, 0, 1, 1], [], []>} : vector<8x4xbf16>, vector<4x128xbf16>, vector<8x128xf32> -> vector<8x128xf32>
    %44 = arith.addf %39, %43 : vector<8x128xf32>
    %c0_46 = arith.constant 0 : index
    %c0_47 = arith.constant 0 : index
    %c2_48 = arith.constant 2 : index
    %c0_49 = arith.constant 0 : index
    %c0_50 = arith.constant 0 : index
    %45 = vector.load %arg2[%c0_46, %c0_47, %c2_48, %c0_49, %c0_50] : memref<1x1x4x4x256xbf16, #tpu.memory_space<vmem>>, vector<1x1x1x4x256xbf16>
    %46 = vector.shape_cast %45 : vector<1x1x1x4x256xbf16> to vector<4x256xbf16>
    %47 = vector.extract_strided_slice %46 {offsets = [0, 0], sizes = [4, 128], strides = [1, 1]} : vector<4x256xbf16> to vector<4x128xbf16>
    %c2_51 = arith.constant 2 : index
    %c0_52 = arith.constant 0 : index
    %c0_53 = arith.constant 0 : index
    %c0_54 = arith.constant 0 : index
    %48 = vector.load %arg3[%c2_51, %c0_52, %c0_53, %c0_54] : memref<4x4x8x4xbf16, #tpu.memory_space<vmem>>, vector<1x1x8x4xbf16>
    %49 = vector.shape_cast %48 : vector<1x1x8x4xbf16> to vector<8x4xbf16>
    %cst_55 = arith.constant dense<0.000000e+00> : vector<8x128xf32>
    %50 = tpu.matmul %49, %47, %cst_55 {dimension_numbers = #tpu.dot_dimension_numbers<[1], [0], [0], [1], [0, 0, 1, 1], [], []>} : vector<8x4xbf16>, vector<4x128xbf16>, vector<8x128xf32> -> vector<8x128xf32>
    %51 = arith.addf %44, %50 : vector<8x128xf32>
    %52 = vector.extract_strided_slice %46 {offsets = [0, 1], sizes = [4, 128], strides = [1, 1]} : vector<4x256xbf16> to vector<4x128xbf16>
    %c2_56 = arith.constant 2 : index
    %c1_57 = arith.constant 1 : index
    %c0_58 = arith.constant 0 : index
    %c0_59 = arith.constant 0 : index
    %53 = vector.load %arg3[%c2_56, %c1_57, %c0_58, %c0_59] : memref<4x4x8x4xbf16, #tpu.memory_space<vmem>>, vector<1x1x8x4xbf16>
    %54 = vector.shape_cast %53 : vector<1x1x8x4xbf16> to vector<8x4xbf16>
    %cst_60 = arith.constant dense<0.000000e+00> : vector<8x128xf32>
    %55 = tpu.matmul %54, %52, %cst_60 {dimension_numbers = #tpu.dot_dimension_numbers<[1], [0], [0], [1], [0, 0, 1, 1], [], []>} : vector<8x4xbf16>, vector<4x128xbf16>, vector<8x128xf32> -> vector<8x128xf32>
    %56 = arith.addf %51, %55 : vector<8x128xf32>
    %57 = vector.extract_strided_slice %46 {offsets = [0, 9], sizes = [4, 128], strides = [1, 1]} : vector<4x256xbf16> to vector<4x128xbf16>
    %c2_61 = arith.constant 2 : index
    %c2_62 = arith.constant 2 : index
    %c0_63 = arith.constant 0 : index
    %c0_64 = arith.constant 0 : index
    %58 = vector.load %arg3[%c2_61, %c2_62, %c0_63, %c0_64] : memref<4x4x8x4xbf16, #tpu.memory_space<vmem>>, vector<1x1x8x4xbf16>
    %59 = vector.shape_cast %58 : vector<1x1x8x4xbf16> to vector<8x4xbf16>
    %cst_65 = arith.constant dense<0.000000e+00> : vector<8x128xf32>
    %60 = tpu.matmul %59, %57, %cst_65 {dimension_numbers = #tpu.dot_dimension_numbers<[1], [0], [0], [1], [0, 0, 1, 1], [], []>} : vector<8x4xbf16>, vector<4x128xbf16>, vector<8x128xf32> -> vector<8x128xf32>
    %61 = arith.addf %56, %60 : vector<8x128xf32>
    %62 = vector.extract_strided_slice %46 {offsets = [0, 10], sizes = [4, 128], strides = [1, 1]} : vector<4x256xbf16> to vector<4x128xbf16>
    %c2_66 = arith.constant 2 : index
    %c3_67 = arith.constant 3 : index
    %c0_68 = arith.constant 0 : index
    %c0_69 = arith.constant 0 : index
    %63 = vector.load %arg3[%c2_66, %c3_67, %c0_68, %c0_69] : memref<4x4x8x4xbf16, #tpu.memory_space<vmem>>, vector<1x1x8x4xbf16>
    %64 = vector.shape_cast %63 : vector<1x1x8x4xbf16> to vector<8x4xbf16>
    %cst_70 = arith.constant dense<0.000000e+00> : vector<8x128xf32>
    %65 = tpu.matmul %64, %62, %cst_70 {dimension_numbers = #tpu.dot_dimension_numbers<[1], [0], [0], [1], [0, 0, 1, 1], [], []>} : vector<8x4xbf16>, vector<4x128xbf16>, vector<8x128xf32> -> vector<8x128xf32>
    %66 = arith.addf %61, %65 : vector<8x128xf32>
    %c0_71 = arith.constant 0 : index
    %c0_72 = arith.constant 0 : index
    %c3_73 = arith.constant 3 : index
    %c0_74 = arith.constant 0 : index
    %c0_75 = arith.constant 0 : index
    %67 = vector.load %arg2[%c0_71, %c0_72, %c3_73, %c0_74, %c0_75] : memref<1x1x4x4x256xbf16, #tpu.memory_space<vmem>>, vector<1x1x1x4x256xbf16>
    %68 = vector.shape_cast %67 : vector<1x1x1x4x256xbf16> to vector<4x256xbf16>
    %69 = vector.extract_strided_slice %68 {offsets = [0, 0], sizes = [4, 128], strides = [1, 1]} : vector<4x256xbf16> to vector<4x128xbf16>
    %c3_76 = arith.constant 3 : index
    %c0_77 = arith.constant 0 : index
    %c0_78 = arith.constant 0 : index
    %c0_79 = arith.constant 0 : index
    %70 = vector.load %arg3[%c3_76, %c0_77, %c0_78, %c0_79] : memref<4x4x8x4xbf16, #tpu.memory_space<vmem>>, vector<1x1x8x4xbf16>
    %71 = vector.shape_cast %70 : vector<1x1x8x4xbf16> to vector<8x4xbf16>
    %cst_80 = arith.constant dense<0.000000e+00> : vector<8x128xf32>
    %72 = tpu.matmul %71, %69, %cst_80 {dimension_numbers = #tpu.dot_dimension_numbers<[1], [0], [0], [1], [0, 0, 1, 1], [], []>} : vector<8x4xbf16>, vector<4x128xbf16>, vector<8x128xf32> -> vector<8x128xf32>
    %73 = arith.addf %66, %72 : vector<8x128xf32>
    %74 = vector.extract_strided_slice %68 {offsets = [0, 1], sizes = [4, 128], strides = [1, 1]} : vector<4x256xbf16> to vector<4x128xbf16>
    %c3_81 = arith.constant 3 : index
    %c1_82 = arith.constant 1 : index
    %c0_83 = arith.constant 0 : index
    %c0_84 = arith.constant 0 : index
    %75 = vector.load %arg3[%c3_81, %c1_82, %c0_83, %c0_84] : memref<4x4x8x4xbf16, #tpu.memory_space<vmem>>, vector<1x1x8x4xbf16>
    %76 = vector.shape_cast %75 : vector<1x1x8x4xbf16> to vector<8x4xbf16>
    %cst_85 = arith.constant dense<0.000000e+00> : vector<8x128xf32>
    %77 = tpu.matmul %76, %74, %cst_85 {dimension_numbers = #tpu.dot_dimension_numbers<[1], [0], [0], [1], [0, 0, 1, 1], [], []>} : vector<8x4xbf16>, vector<4x128xbf16>, vector<8x128xf32> -> vector<8x128xf32>
    %78 = arith.addf %73, %77 : vector<8x128xf32>
    %79 = vector.extract_strided_slice %68 {offsets = [0, 9], sizes = [4, 128], strides = [1, 1]} : vector<4x256xbf16> to vector<4x128xbf16>
    %c3_86 = arith.constant 3 : index
    %c2_87 = arith.constant 2 : index
    %c0_88 = arith.constant 0 : index
    %c0_89 = arith.constant 0 : index
    %80 = vector.load %arg3[%c3_86, %c2_87, %c0_88, %c0_89] : memref<4x4x8x4xbf16, #tpu.memory_space<vmem>>, vector<1x1x8x4xbf16>
    %81 = vector.shape_cast %80 : vector<1x1x8x4xbf16> to vector<8x4xbf16>
    %cst_90 = arith.constant dense<0.000000e+00> : vector<8x128xf32>
    %82 = tpu.matmul %81, %79, %cst_90 {dimension_numbers = #tpu.dot_dimension_numbers<[1], [0], [0], [1], [0, 0, 1, 1], [], []>} : vector<8x4xbf16>, vector<4x128xbf16>, vector<8x128xf32> -> vector<8x128xf32>
    %83 = arith.addf %78, %82 : vector<8x128xf32>
    %84 = vector.extract_strided_slice %68 {offsets = [0, 10], sizes = [4, 128], strides = [1, 1]} : vector<4x256xbf16> to vector<4x128xbf16>
    %c3_91 = arith.constant 3 : index
    %c3_92 = arith.constant 3 : index
    %c0_93 = arith.constant 0 : index
    %c0_94 = arith.constant 0 : index
    %85 = vector.load %arg3[%c3_91, %c3_92, %c0_93, %c0_94] : memref<4x4x8x4xbf16, #tpu.memory_space<vmem>>, vector<1x1x8x4xbf16>
    %86 = vector.shape_cast %85 : vector<1x1x8x4xbf16> to vector<8x4xbf16>
    %cst_95 = arith.constant dense<0.000000e+00> : vector<8x128xf32>
    %87 = tpu.matmul %86, %84, %cst_95 {dimension_numbers = #tpu.dot_dimension_numbers<[1], [0], [0], [1], [0, 0, 1, 1], [], []>} : vector<8x4xbf16>, vector<4x128xbf16>, vector<8x128xf32> -> vector<8x128xf32>
    %88 = arith.addf %83, %87 : vector<8x128xf32>
    %c0_96 = arith.constant 0 : index
    %c0_97 = arith.constant 0 : index
    %89 = vector.load %arg4[%c0_96, %c0_97] : memref<8x4xf32, #tpu.memory_space<vmem>>, vector<8x1xf32>
    %c0_98 = arith.constant 0 : index
    %c1_99 = arith.constant 1 : index
    %90 = vector.load %arg4[%c0_98, %c1_99] : memref<8x4xf32, #tpu.memory_space<vmem>>, vector<8x1xf32>
    %c0_100 = arith.constant 0 : index
    %c2_101 = arith.constant 2 : index
    %91 = vector.load %arg4[%c0_100, %c2_101] : memref<8x4xf32, #tpu.memory_space<vmem>>, vector<8x1xf32>
    %c0_102 = arith.constant 0 : index
    %c3_103 = arith.constant 3 : index
    %92 = vector.load %arg4[%c0_102, %c3_103] : memref<8x4xf32, #tpu.memory_space<vmem>>, vector<8x1xf32>
    %93 = vector.broadcast %89 : vector<8x1xf32> to vector<8x128xf32>
    %94 = arith.addf %88, %93 : vector<8x128xf32>
    %cst_104 = arith.constant 0.000000e+00 : f32
    %95 = vector.broadcast %cst_104 : f32 to vector<8x128xf32>
    %96 = arith.cmpf oge, %94, %95 : vector<8x128xf32>
    %97 = vector.shape_cast %90 : vector<8x1xf32> to vector<8x1xf32>
    %98 = vector.broadcast %97 : vector<8x1xf32> to vector<8x128xf32>
    %99 = vector.shape_cast %91 : vector<8x1xf32> to vector<8x1xf32>
    %100 = vector.broadcast %99 : vector<8x1xf32> to vector<8x128xf32>
    %101 = arith.select %96, %98, %100 : vector<8x128xi1>, vector<8x128xf32>
    %102 = arith.mulf %94, %101 : vector<8x128xf32>
    %103 = vector.broadcast %92 : vector<8x1xf32> to vector<8x128xf32>
    %104 = arith.addf %102, %103 : vector<8x128xf32>
    %c0_105 = arith.constant 0 : index
    %c0_106 = arith.constant 0 : index
    %c0_107 = arith.constant 0 : index
    %105 = vector.load %arg5[%c0_105, %c0_106, %c0_107] : memref<1x8x128xf32, #tpu.memory_space<vmem>>, vector<1x8x128xf32>
    %106 = vector.shape_cast %105 : vector<1x8x128xf32> to vector<8x128xf32>
    %107 = vector.shape_cast %104 : vector<8x128xf32> to vector<1x8x128xf32>
    tpu.vector_store %arg5[%c0_105, %c0_106, %c0_107], %107 {strides = array<i32>} : memref<1x8x128xf32, #tpu.memory_space<vmem>>, vector<1x8x128xf32>,
    return
  }
  func.func @transform_0(%arg0: i32, %arg1: i32) -> (i32, i32, i32, i32, i32) {
    %c0_i32 = arith.constant 0 : i32
    %c0_i32_0 = arith.constant 0 : i32
    %c0_i32_1 = arith.constant 0 : i32
    %c0_i32_2 = arith.constant 0 : i32
    return %arg0, %arg1, %c0_i32, %c0_i32_0, %c0_i32_1 : i32, i32, i32, i32, i32
  }
  func.func @transform_1(%arg0: i32, %arg1: i32) -> (i32, i32, i32, i32) {
    %c0_i32 = arith.constant 0 : i32
    %c0_i32_0 = arith.constant 0 : i32
    %c0_i32_1 = arith.constant 0 : i32
    %c0_i32_2 = arith.constant 0 : i32
    %c0_i32_3 = arith.constant 0 : i32
    return %c0_i32, %c0_i32_0, %c0_i32_1, %c0_i32_2 : i32, i32, i32, i32
  }
  func.func @transform_2(%arg0: i32, %arg1: i32) -> (i32, i32) {
    %c0_i32 = arith.constant 0 : i32
    %c0_i32_0 = arith.constant 0 : i32
    %c0_i32_1 = arith.constant 0 : i32
    return %c0_i32, %c0_i32_0 : i32, i32
  }
  func.func @transform_3(%arg0: i32, %arg1: i32) -> (i32, i32, i32) {
    %c0_i32 = arith.constant 0 : i32
    %c0_i32_0 = arith.constant 0 : i32
    return %arg0, %c0_i32, %arg1 : i32, i32, i32
  }
}

</mosaic_0001>

<bundles_post_ra>
// kernel: nsynth_block_enc.1
= control target key start
LH: loop header
LB: loop body
LE: loop exit
PB: predicated region body
PF: predicated region fallthrough
CT: control target
= control target key end

     0   :  { %s1462_s12 = smov 0   ;;  %s1464_s13 = smov 0   ;;  %s1676_s0 = inlined_call_operand.vmem [shape: bf16[2,1,4,4,256], index: 0, kind: input, shape index: {}]   ;;  %s1677_s1 = inlined_call_operand.vmem [shape: bf16[4,4,8,4], index: 1, kind: input, shape index: {}]   ;;  %s1678_s2 = inlined_call_operand.vmem [shape: f32[8,4], index: 2, kind: input, shape index: {}]   ;;  %s1679_s3 = inlined_call_operand.vmem [shape: f32[2,8,128], index: 3, kind: output, shape index: {}]  }
   0x1   :  { %s1466_s14 = smov 0  }
   0x2 LB: > { %s25_s15 = sadd.s32 1, %s1426_s13  ;;  %p1201_p0 = scmp.ge.s32.totalorder %s1430_s14, 1  ;;  %s1430_s14 = sphi %s1466_s14, %s13_s14   ;;  %s1426_s13 = sphi %s1464_s13, %s1681_s13   ;;  %s1422_s12 = sphi %s1462_s12, %s1680_s12  }
   0x3   : > { %p27_p1 = scmp.ge.s32.totalorder %s25_s15, 2  ;;  %p157_p2 = scmp.lt.s32.totalorder %s1430_s14, 3 }
   0x5   : > { %s1683_s15 = smov (%p27_p1, %s25_s15), 0  ;;  %p158_p3 = pnand %p1201_p0, %p157_p2 }
   0x6   : > { %p187_p4 = scmp.lt.s32.totalorder (!%p158_p3), %s1422_s12, 1  ;;  %s1435_s22 = smov (!%p158_p3), 119  }
   0x7   : > { %161 = sbr.rel (%p158_p3) target bundleno = 407 (0x197), region = 32  ;;  %s1436_s23 = smov (!%p158_p3), 127  }
   0x8   : > { %s1437_s24 = smov (!%p158_p3), 118  }
   0xc   : > { %v212_v0 = vlaneseq  ;;  %v1432_v1 = vmov 1983009808   ;;  %v1433_v3 = vmov 0.0   ;;  %s1685_s12 = smov (!%p187_p4, %s1422_s12), 1  ;;  %vm1434_vm0 = vmmov 0   ;;  %v1093_v21 = vld [vmem:[%s1678_s2] sm:$0xff] }
   0xd   : > { %v210_v2 = vunpack.c.l.s4 %v1432_v1  ;;  %1280 = vmatprep.subr.bf16.mxu1 %v1433_v3  ;;  %1274 = vmatprep.subr.bf16.mxu0 %v1433_v3  ;;  %s1241_s16 = sshll.u32 %s1685_s12, 4  ;;  %vm227_vm1 = vcmask 1041408   ;;  %v205_v10 = vld [vmem:[%s1677_s1] sm:$0xf]  ;;  %vm223_vm2 = vcmask 31744   ;;  %v1438_v22 = vmov 1  }
   0xe   : > { %v213_v4 = vshrl.u32 %v212_v0, 7  ;;  %1282 = vmatprep.mubr.msk.bf16.mxu1 %vm1434_vm0, %v1433_v3  ;;  %1276 = vmatprep.mubr.msk.bf16.mxu0 %vm1434_vm0, %v1433_v3  ;;  %s1492_s19 = scalar_lea.vmem %s1676_s0, %s1241_s16  ;;  %v1439_v23 = vmov 0   ;;  %v1440_v24 = vmov 2   ;;  %v1441_v25 = vmov 3   ;;  %v1205_v33 = vld [vmem:[%s1677_s1 + $0x4] sm:$0xf] }
   0xf   : > { %v211_v5 = vunpack.c.0.s8 %v210_v2  ;;  %v204_v7 = vld [vmem:[%s1492_s19] sm:$0xf]  ;;  %v1502_v12 = vld [vmem:[%s1492_s19 + $0x4] sm:$0xf]  ;;  %v1514_v15 = vld [vmem:[%s1492_s19 + $0x8] sm:$0xf]  ;;  %1405 = vset.pattern.permute.xlu1 %v1438_v22  ;;  %1404 = vset.pattern.permute.xlu0 %v1439_v23 }
  0x10   : > { %v275_v9 = vsel %vm227_vm1, %v204_v7, 0  ;;  %v1522_v18 = vld [vmem:[%s1492_s19 + $0xc] sm:$0xf]  ;;  %vm221_vm3 = vcmask 1039360   ;;  %vm323_vm4 = vcmask 973824   ;;  %vm378_vm5 = vcmask 965632  }
  0x11   : > { %v214_v6 = vsub.s32 %v211_v5, %v213_v4  ;;  %1281 = vmatpush3.bf16.msra.mxu1 %v275_v9  ;;  %v1210_v39 = vld [vmem:[%s1677_s1 + $0xc] sm:$0xf]  ;;  %v1208_v44 = vld [vmem:[%s1677_s1 + $0x8] sm:$0xf]  ;;  %v435_v45 = vsel %vm227_vm1, %v1502_v12, 0  ;;  %v657_v0 = vsel %vm227_vm1, %v1514_v15, 0 }
  0x12   : > { %1292 = vmatprep.subr.bf16.mxu1 %v1433_v3  ;;  %v1215_v48 = vld [vmem:[%s1677_s1 + $0x14] sm:$0xf]  ;;  %v1213_v54 = vld [vmem:[%s1677_s1 + $0x10] sm:$0xf]  ;;  %v1219_v59 = vld [vmem:[%s1677_s1 + $0x1c] sm:$0xf] }
  0x13   : > { %v215_v8 = vrot.slane %v204_v7, %v214_v6  ;;  %v487_v13 = vrot.slane %v1502_v12, %v214_v6  ;;  %v709_v16 = vrot.slane %v1514_v15, %v214_v6  ;;  %v931_v19 = vrot.slane %v1522_v18, %v214_v6  ;;  %v1217_v63 = vld [vmem:[%s1677_s1 + $0x18] sm:$0xf]  ;;  %v1224_v5 = vld [vmem:[%s1677_s1 + $0x24] sm:$0xf]  ;;  %v1228_v15 = vld [vmem:[%s1677_s1 + $0x2c] sm:$0xf] }
  0x14   : > { %1283 = vmatmul.mubr.msk.bf16.vlgmr.msra.gmra.mxu1 %vm223_vm2, %v205_v10  ;;  %v1222_v10 = vld [vmem:[%s1677_s1 + $0x20] sm:$0xf]  ;;  %v1233_v23 = vld [vmem:[%s1677_s1 + $0x34] sm:$0xf]  ;;  %s1204_s7 = sshll.u32 %s1685_s12, 3 }
  0x15   : > { %319 = vrot.lane.b32.xlu1 %v215_v8, %s1435_s22  ;;  %217 = vrot.lane.b32.xlu0 %v215_v8, %s1436_s23  ;;  %v216_v11 = vcombine.high %v215_v8, %v215_v8  ;;  %v488_v14 = vcombine.high %v487_v13, %v487_v13  ;;  %v710_v17 = vcombine.high %v709_v16, %v709_v16  ;;  %s202_s10 = scalar_lea.vmem %s1679_s3, %s1204_s7 }
  0x16   : > { %1294 = vmatprep.mubr.msk.bf16.mxu1 %vm1434_vm0, %v1433_v3  ;;  %v932_v20 = vcombine.high %v931_v19, %v931_v19 }
  0x19   : > { %321 = vrot.lane.b32.xlu1 %v216_v11, %s1435_s22  ;;  %219 = vrot.lane.b32.xlu0 %v216_v11, %s1436_s23 }
  0x1d   : > { %376 = vrot.lane.b32.xlu1 %v216_v11, %s1437_s24  ;;  %374 = vrot.lane.b32.xlu0 %v215_v8, %s1437_s24 }
  0x21   : > { %491 = vrot.lane.b32.xlu1 %v488_v14, %s1436_s23  ;;  %489 = vrot.lane.b32.xlu0 %v487_v13, %s1436_s23 }
  0x25   : > { %545 = vrot.lane.b32.xlu1 %v488_v14, %s1435_s22  ;;  %543 = vrot.lane.b32.xlu0 %v487_v13, %s1435_s22 }
  0x29   : > { %599 = vrot.lane.b32.xlu1 %v488_v14, %s1437_s24  ;;  %597 = vrot.lane.b32.xlu0 %v487_v13, %s1437_s24 }
  0x2d   : > { %713 = vrot.lane.b32.xlu1 %v710_v17, %s1436_s23  ;;  %711 = vrot.lane.b32.xlu0 %v709_v16, %s1436_s23 }
  0x31   : > { %767 = vrot.lane.b32.xlu1 %v710_v17, %s1435_s22  ;;  %765 = vrot.lane.b32.xlu0 %v709_v16, %s1435_s22 }
  0x35   : > { %821 = vrot.lane.b32.xlu1 %v710_v17, %s1437_s24  ;;  %819 = vrot.lane.b32.xlu0 %v709_v16, %s1437_s24 }
  0x39   : > { %935 = vrot.lane.b32.xlu1 %v932_v20, %s1436_s23  ;;  %933 = vrot.lane.b32.xlu0 %v931_v19, %s1436_s23 }
  0x3d   : > { %989 = vrot.lane.b32.xlu1 %v932_v20, %s1435_s22  ;;  %987 = vrot.lane.b32.xlu0 %v931_v19, %s1435_s22 }
  0x41   : > { %1043 = vrot.lane.b32.xlu1 %v932_v20, %s1437_s24  ;;  %1041 = vrot.lane.b32.xlu0 %v931_v19, %s1437_s24  ;;  %v1226_v20 = vld [vmem:[%s1677_s1 + $0x28] sm:$0xf] }
  0x45   : > { %1102 = vperm.xlu1 %1405, %v1093_v21   ;;  %1096 = vperm.xlu0 %1404, %v1093_v21  }
  0x49   : > { %1406 = vset.pattern.permute.xlu1 %v1440_v24  ;;  %1407 = vset.pattern.permute.xlu0 %v1441_v25  ;;  %v1231_v25 = vld [vmem:[%s1677_s1 + $0x30] sm:$0xf] }
  0x4a   : > { %1106 = vperm.xlu1 %1406, %v1093_v21   ;;  %1112 = vperm.xlu0 %1407, %v1093_v21   ;;  %v879_v21 = vsel %vm227_vm1, %v1522_v18, 0 }
  0x87   : > { %v320_v26 = vpop.permute.xlu1 %319  ;;  %v218_v27 = vpop.permute.xlu0 %217 }
  0x8b   : > { %v322_v28 = vpop.permute.xlu1 %321  ;;  %v220_v29 = vpop.permute.xlu0 %219 }
  0x8c   : > { %v222_v30 = vsel %vm221_vm3, %v218_v27, %v220_v29  ;;  %v324_v32 = vsel %vm323_vm4, %v320_v26, %v322_v28  ;;  %v1237_v27 = vld [vmem:[%s1677_s1 + $0x3c] sm:$0xf]  ;;  %v1235_v28 = vld [vmem:[%s1677_s1 + $0x38] sm:$0xf] }
  0x8d   : > { %v229_v31 = vsel %vm227_vm1, %v222_v30, 0  ;;  %v329_v37 = vsel %vm227_vm1, %v324_v32, 0 }
  0x8e   : > { %1275 = vmatpush3.bf16.msra.mxu0 %v229_v31 }
  0x8f   : > { %v377_v34 = vpop.permute.xlu1 %376  ;;  %v375_v35 = vpop.permute.xlu0 %374  ;;  %1286 = vmatprep.subr.bf16.mxu0 %v1433_v3 }
  0x90   : > { %v379_v36 = vsel %vm378_vm5, %v375_v35, %v377_v34 }
  0x91   : > { %v384_v38 = vsel %vm227_vm1, %v379_v36, 0  ;;  %1277 = vmatmul.mubr.msk.bf16.vlgmr.msra.gmra.mxu0 %vm223_vm2, %v1205_v33 }
  0x92   : > { %1287 = vmatpush3.bf16.msra.mxu0 %v329_v37  ;;  %1293 = vmatpush3.bf16.msra.mxu1 %v384_v38 }
  0x93   : > { %v492_v40 = vpop.permute.xlu1 %491  ;;  %1288 = vmatprep.mubr.msk.bf16.mxu0 %vm1434_vm0, %v1433_v3  ;;  %v490_v41 = vpop.permute.xlu0 %489  ;;  %1298 = vmatprep.subr.bf16.mxu0 %v1433_v3 }
  0x94   : > { %v493_v42 = vsel %vm221_vm3, %v490_v41, %v492_v40  ;;  %1304 = vmatprep.subr.bf16.mxu1 %v1433_v3 }
  0x95   : > { %1295 = vmatmul.mubr.msk.bf16.vlgmr.msra.gmra.mxu1 %vm223_vm2, %v1210_v39  ;;  %v498_v43 = vsel %vm227_vm1, %v493_v42, 0 }
  0x96   : > { %1305 = vmatpush3.bf16.msra.mxu1 %v498_v43  ;;  %1306 = vmatprep.mubr.msk.bf16.mxu1 %vm1434_vm0, %v1433_v3 }
  0x97   : > { %v546_v46 = vpop.permute.xlu1 %545  ;;  %v544_v47 = vpop.permute.xlu0 %543  ;;  %1316 = vmatprep.subr.bf16.mxu1 %v1433_v3 }
  0x98   : > { %v547_v51 = vsel %vm323_vm4, %v544_v47, %v546_v46 }
  0x99   : > { %1289 = vmatmul.mubr.msk.bf16.vlgmr.msra.gmra.mxu0 %vm223_vm2, %v1208_v44  ;;  %v552_v55 = vsel %vm227_vm1, %v547_v51, 0 }
  0x9a   : > { %1299 = vmatpush3.bf16.msra.mxu0 %v435_v45  ;;  %1300 = vmatprep.mubr.msk.bf16.mxu0 %vm1434_vm0, %v1433_v3 }
  0x9b   : > { %v600_v49 = vpop.permute.xlu1 %599  ;;  %1310 = vmatprep.subr.bf16.mxu0 %v1433_v3  ;;  %v598_v50 = vpop.permute.xlu0 %597 }
  0x9c   : > { %v601_v52 = vsel %vm378_vm5, %v598_v50, %v600_v49 }
  0x9d   : > { %1307 = vmatmul.mubr.msk.bf16.vlgmr.msra.gmra.mxu1 %vm223_vm2, %v1215_v48  ;;  %v606_v53 = vsel %vm227_vm1, %v601_v52, 0 }
  0x9e   : > { %1317 = vmatpush3.bf16.msra.mxu1 %v606_v53  ;;  %1318 = vmatprep.mubr.msk.bf16.mxu1 %vm1434_vm0, %v1433_v3 }
  0x9f   : > { %v714_v56 = vpop.permute.xlu1 %713  ;;  %v712_v57 = vpop.permute.xlu0 %711  ;;  %1328 = vmatprep.subr.bf16.mxu1 %v1433_v3 }
  0xa0   : > { %v715_v58 = vsel %vm221_vm3, %v712_v57, %v714_v56 }
  0xa1   : > { %1301 = vmatmul.mubr.msk.bf16.vlgmr.msra.gmra.mxu0 %vm223_vm2, %v1213_v54  ;;  %v720_v60 = vsel %vm227_vm1, %v715_v58, 0 }
  0xa2   : > { %1311 = vmatpush3.bf16.msra.mxu0 %v552_v55  ;;  %1312 = vmatprep.mubr.msk.bf16.mxu0 %vm1434_vm0, %v1433_v3 }
  0xa3   : > { %1322 = vmatprep.subr.bf16.mxu0 %v1433_v3  ;;  %v768_v61 = vpop.permute.xlu1 %767  ;;  %v766_v62 = vpop.permute.xlu0 %765 }
  0xa4   : > { %v769_v9 = vsel %vm323_vm4, %v766_v62, %v768_v61 }
  0xa5   : > { %1319 = vmatmul.mubr.msk.bf16.vlgmr.msra.gmra.mxu1 %vm223_vm2, %v1219_v59  ;;  %v774_v11 = vsel %vm227_vm1, %v769_v9, 0 }
  0xa6   : > { %1329 = vmatpush3.bf16.msra.mxu1 %v720_v60  ;;  %1330 = vmatprep.mubr.msk.bf16.mxu1 %vm1434_vm0, %v1433_v3 }
  0xa7   : > { %v822_v1 = vpop.permute.xlu1 %821  ;;  %v820_v2 = vpop.permute.xlu0 %819  ;;  %1340 = vmatprep.subr.bf16.mxu1 %v1433_v3 }
  0xa8   : > { %v823_v4 = vsel %vm378_vm5, %v820_v2, %v822_v1 }
  0xa9   : > { %1313 = vmatmul.mubr.msk.bf16.vlgmr.msra.gmra.mxu0 %vm223_vm2, %v1217_v63  ;;  %v828_v6 = vsel %vm227_vm1, %v823_v4, 0 }
  0xaa   : > { %1323 = vmatpush3.bf16.msra.mxu0 %v657_v0  ;;  %1324 = vmatprep.mubr.msk.bf16.mxu0 %vm1434_vm0, %v1433_v3 }
  0xab   : > { %1334 = vmatprep.subr.bf16.mxu0 %v1433_v3  ;;  %v936_v7 = vpop.permute.xlu1 %935  ;;  %v934_v8 = vpop.permute.xlu0 %933 }
  0xac   : > { %v937_v14 = vsel %vm221_vm3, %v934_v8, %v936_v7 }
  0xad   : > { %1331 = vmatmul.mubr.msk.bf16.vlgmr.msra.gmra.mxu1 %vm223_vm2, %v1224_v5  ;;  %v942_v16 = vsel %vm227_vm1, %v937_v14, 0 }
  0xae   : > { %1341 = vmatpush3.bf16.msra.mxu1 %v828_v6  ;;  %1342 = vmatprep.mubr.msk.bf16.mxu1 %vm1434_vm0, %v1433_v3 }
  0xaf   : > { %1352 = vmatprep.subr.bf16.mxu1 %v1433_v3  ;;  %v990_v12 = vpop.permute.xlu1 %989  ;;  %v988_v13 = vpop.permute.xlu0 %987 }
  0xb0   : > { %v991_v18 = vsel %vm323_vm4, %v988_v13, %v990_v12 }
  0xb1   : > { %1325 = vmatmul.mubr.msk.bf16.vlgmr.msra.gmra.mxu0 %vm223_vm2, %v1222_v10  ;;  %v996_v26 = vsel %vm227_vm1, %v991_v18, 0 }
  0xb2   : > { %1335 = vmatpush3.bf16.msra.mxu0 %v774_v11  ;;  %1336 = vmatprep.mubr.msk.bf16.mxu0 %vm1434_vm0, %v1433_v3 }
  0xb3   : > { %1346 = vmatprep.subr.bf16.mxu0 %v1433_v3  ;;  %v1044_v17 = vpop.permute.xlu1 %1043  ;;  %v1042_v19 = vpop.permute.xlu0 %1041 }
  0xb4   : > { %v1045_v22 = vsel %vm378_vm5, %v1042_v19, %v1044_v17 }
  0xb5   : > { %1343 = vmatmul.mubr.msk.bf16.vlgmr.msra.gmra.mxu1 %vm223_vm2, %v1228_v15  ;;  %v1050_v24 = vsel %vm227_vm1, %v1045_v22, 0 }
  0xb6   : > { %1353 = vmatpush3.bf16.msra.mxu1 %v942_v16  ;;  %1354 = vmatprep.mubr.msk.bf16.mxu1 %vm1434_vm0, %v1433_v3 }
  0xb7   : > { %1364 = vmatprep.subr.bf16.mxu1 %v1433_v3 }
  0xb9   : > { %1337 = vmatmul.mubr.msk.bf16.vlgmr.msra.gmra.mxu0 %vm223_vm2, %v1226_v20 }
  0xba   : > { %1347 = vmatpush3.bf16.msra.mxu0 %v879_v21  ;;  %1348 = vmatprep.mubr.msk.bf16.mxu0 %vm1434_vm0, %v1433_v3 }
  0xbb   : > { %1358 = vmatprep.subr.bf16.mxu0 %v1433_v3 }
  0xbd   : > { %1355 = vmatmul.mubr.msk.bf16.vlgmr.msra.gmra.mxu1 %vm223_vm2, %v1233_v23 }
  0xbe   : > { %1365 = vmatpush3.bf16.msra.mxu1 %v1050_v24  ;;  %1366 = vmatprep.mubr.msk.bf16.mxu1 %vm1434_vm0, %v1433_v3 }
  0xc1   : > { %1349 = vmatmul.mubr.msk.bf16.vlgmr.msra.gmra.mxu0 %vm223_vm2, %v1231_v25 }
  0xc2   : > { %1359 = vmatpush3.bf16.msra.mxu0 %v996_v26  ;;  %1360 = vmatprep.mubr.msk.bf16.mxu0 %vm1434_vm0, %v1433_v3 }
  0xc5   : > { %1367 = vmatmul.mubr.msk.bf16.vlgmr.msra.gmra.mxu1 %vm223_vm2, %v1237_v27 }
  0xc9   : > { %1361 = vmatmul.mubr.msk.bf16.vlgmr.msra.gmra.mxu0 %vm223_vm2, %v1235_v28 }
  0xd4   : > { %v311_v29 = vpop.f32.mrf.mxu1 }
  0xd6   : > { %v1284_v30 = vpop.f32.mrf.mxu1 }
  0xd8   : > { %v314_v31 = vpop.f32.mrf.mxu1 }
  0xda   : > { %v1285_v32 = vpop.f32.mrf.mxu1 }
 0x151   : > { %v265_v33 = vpop.f32.mrf.mxu0 }
 0x152   : > { %v312_v50 = vadd.f32 %v311_v29, %v265_v33 }
 0x153   : > { %v1278_v34 = vpop.f32.mrf.mxu0 }
 0x155   : > { %v268_v35 = vpop.f32.mrf.mxu0  ;;  %v420_v36 = vpop.f32.mrf.mxu1 }
 0x157   : > { %v1279_v37 = vpop.f32.mrf.mxu0  ;;  %v1296_v38 = vpop.f32.mrf.mxu1 }
 0x159   : > { %v365_v39 = vpop.f32.mrf.mxu0  ;;  %v423_v3 = vpop.f32.mrf.mxu1 }
 0x15a   : > { %v371_v53 = vadd.f32 %v365_v39, %v312_v50  ;;  %v1097_v3 = vpop.permute.xlu0 %1096 }
 0x15b   : > { %v1290_v40 = vpop.f32.mrf.mxu0  ;;  %v1297_v41 = vpop.f32.mrf.mxu1 }
 0x15c   : > { %v426_v58 = vadd.f32 %v420_v36, %v371_v53  ;;  %v1103_v36 = vpop.permute.xlu1 %1102 }
 0x15d   : > { %v368_v42 = vpop.f32.mrf.mxu0  ;;  %v534_v43 = vpop.f32.mrf.mxu1 }
 0x15f   : > { %v1291_v44 = vpop.f32.mrf.mxu0  ;;  %v1308_v45 = vpop.f32.mrf.mxu1 }
 0x160   : > { %v1107_v45 = vpop.permute.xlu1 %1106 }
 0x161   : > { %v471_v46 = vpop.f32.mrf.mxu0  ;;  %v537_v47 = vpop.f32.mrf.mxu1 }
 0x162   : > { %v477_v61 = vadd.f32 %v471_v46, %v426_v58 }
 0x163   : > { %v1302_v48 = vpop.f32.mrf.mxu0  ;;  %v1309_v49 = vpop.f32.mrf.mxu1 }
 0x164   : > { %v540_v2 = vadd.f32 %v534_v43, %v477_v61  ;;  %v1113_v48 = vpop.permute.xlu0 %1112 }
 0x165   : > { %v474_v51 = vpop.f32.mrf.mxu0  ;;  %v642_v52 = vpop.f32.mrf.mxu1 }
 0x167   : > { %v1303_v54 = vpop.f32.mrf.mxu0  ;;  %v1320_v55 = vpop.f32.mrf.mxu1 }
 0x169   : > { %v588_v56 = vpop.f32.mrf.mxu0  ;;  %v645_v57 = vpop.f32.mrf.mxu1 }
 0x16a   : > { %v594_v6 = vadd.f32 %v588_v56, %v540_v2 }
 0x16b   : > { %v1314_v59 = vpop.f32.mrf.mxu0  ;;  %v1321_v60 = vpop.f32.mrf.mxu1 }
 0x16c   : > { %v648_v11 = vadd.f32 %v642_v52, %v594_v6 }
 0x16d   : > { %v591_v62 = vpop.f32.mrf.mxu0  ;;  %v756_v63 = vpop.f32.mrf.mxu1 }
 0x16f   : > { %v1315_v0 = vpop.f32.mrf.mxu0  ;;  %v1332_v1 = vpop.f32.mrf.mxu1 }
 0x171   : > { %v693_v4 = vpop.f32.mrf.mxu0  ;;  %v759_v5 = vpop.f32.mrf.mxu1 }
 0x172   : > { %v699_v14 = vadd.f32 %v693_v4, %v648_v11 }
 0x173   : > { %v1326_v7 = vpop.f32.mrf.mxu0  ;;  %v1333_v8 = vpop.f32.mrf.mxu1 }
 0x174   : > { %v762_v20 = vadd.f32 %v756_v63, %v699_v14 }
 0x175   : > { %v696_v9 = vpop.f32.mrf.mxu0  ;;  %v864_v10 = vpop.f32.mrf.mxu1 }
 0x177   : > { %v1327_v12 = vpop.f32.mrf.mxu0  ;;  %v1344_v13 = vpop.f32.mrf.mxu1 }
 0x179   : > { %v810_v15 = vpop.f32.mrf.mxu0  ;;  %v867_v16 = vpop.f32.mrf.mxu1 }
 0x17a   : > { %v816_v23 = vadd.f32 %v810_v15, %v762_v20 }
 0x17b   : > { %v1338_v17 = vpop.f32.mrf.mxu0  ;;  %v1345_v19 = vpop.f32.mrf.mxu1 }
 0x17c   : > { %v870_v27 = vadd.f32 %v864_v10, %v816_v23 }
 0x17d   : > { %v813_v21 = vpop.f32.mrf.mxu0  ;;  %v978_v22 = vpop.f32.mrf.mxu1 }
 0x17f   : > { %v1339_v24 = vpop.f32.mrf.mxu0  ;;  %v1356_v18 = vpop.f32.mrf.mxu1 }
 0x181   : > { %v915_v25 = vpop.f32.mrf.mxu0  ;;  %v981_v26 = vpop.f32.mrf.mxu1 }
 0x182   : > { %v921_v30 = vadd.f32 %v915_v25, %v870_v27 }
 0x183   : > { %v1350_v28 = vpop.f32.mrf.mxu0  ;;  %v1357_v29 = vpop.f32.mrf.mxu1 }
 0x184   : > { %v984_v35 = vadd.f32 %v978_v22, %v921_v30 }
 0x185   : > { %v918_v31 = vpop.f32.mrf.mxu0  ;;  %v1086_v32 = vpop.f32.mrf.mxu1 }
 0x187   : > { %v1351_v33 = vpop.f32.mrf.mxu0  ;;  %v1368_v34 = vpop.f32.mrf.mxu1 }
 0x189   : > { %v1032_v37 = vpop.f32.mrf.mxu0  ;;  %v1089_v38 = vpop.f32.mrf.mxu1 }
 0x18a   : > { %v1038_v39 = vadd.f32 %v1032_v37, %v984_v35 }
 0x18b   : > { %v1362_v40 = vpop.f32.mrf.mxu0  ;;  %v1369_v41 = vpop.f32.mrf.mxu1 }
 0x18c   : > { %v1092_v42 = vadd.f32 %v1086_v32, %v1038_v39 }
 0x18d   : > { %v1035_v43 = vpop.f32.mrf.mxu0 }
 0x18e   : > { %v1099_v44 = vadd.f32 %v1097_v3, %v1092_v42 }
 0x18f   : > { %v1363_v46 = vpop.f32.mrf.mxu0 }
 0x190   : > { %vm1100_vm6 = vcmp.ge.f32.partialorder %v1099_v44, 0.0 }
 0x191   : > { %v1109_v47 = vsel %vm1100_vm6, %v1103_v36, %v1107_v45 }
 0x192   : > { %v1110_v49 = vmul.f32 %v1109_v47, %v1099_v44 }
 0x194   : > { %v1115_v50 = vadd.f32 %v1113_v48, %v1110_v49 }
 0x196   : > { %1116 = vst [vmem:[%s202_s10] sm:$0xff] %v1115_v50 }
 0x197 PF: > { %s13_s14 = sadd.s32 1, %s1430_s14   ;;  %s1680_s12 = smov %s1426_s13 }
 0x198   : > { %p10_p5 = scmp.ge.s32.totalorder %s13_s14, 4   ;;  %s1681_s13 = smov %s1683_s15 }
 0x19a   :  { %12 = sbr.rel (!%p10_p5) target bundleno = 2 (0x2), region = 80 }

</bundles_post_ra>
